<compile_context>
chip_gen: v5e
topology: v5e:2x2
jax: 0.10.0
libtpu: 0.0.40
codegen_flags: <defaults>
</compile_context>

<pallas_src>
import functools

import jax
import jax.numpy as jnp
from jax.experimental import pallas as pl
from jax.experimental.pallas import tpu as pltpu

HIDDEN = 64        # fixed by the torch module
LANE = 128         # TPU lane width
MAX_TILE_B = 512   # batch tile (sublane axis); multiple of 8, easily fits VMEM


def _round_up(x, m):
    return (x + m - 1) // m * m


def _mlp_kernel(x_ref, w1_ref, b1_ref, w2_ref, b2_ref, w3_ref, b3_ref, o_ref):
    """Fused Linear->ReLU->Linear->ReLU->Linear for one batch tile.

    Weights may be bf16 (MXU-native on v6e/v7x); accumulation is f32 and the
    elementwise bias-add / ReLU run in f32 (friendly to v5e's f32-only VPU).
    """
    wdt = w1_ref.dtype
    x = x_ref[...].astype(wdt)
    h1 = jnp.dot(x, w1_ref[...], preferred_element_type=jnp.float32) + b1_ref[...]
    h1 = jnp.maximum(h1, 0.0).astype(wdt)
    h2 = jnp.dot(h1, w2_ref[...], preferred_element_type=jnp.float32) + b2_ref[...]
    h2 = jnp.maximum(h2, 0.0).astype(wdt)
    out = jnp.dot(h2, w3_ref[...], preferred_element_type=jnp.float32) + b3_ref[...]
    o_ref[...] = out.astype(o_ref.dtype)


@functools.partial(jax.jit, static_argnames=("tile_b",))
def dqn_forward(x, w1, b1, w2, b2, w3, b3, *, tile_b=MAX_TILE_B):
    """Pallas forward pass of DQNAgentModel.net.

    x:  (B, ip_size) f32
    wi: (in_i, out_i) f32 or bf16, bi: (1, out_i) f32
    returns (B, op_size) f32
    """
    B, ip = x.shape
    hid = w1.shape[1]
    op = w3.shape[1]

    # Lane-dense output: pad the final projection to a multiple of 128 lanes so
    # the output writeback uses unmasked vector stores (op_size=4 would lower
    # to masked vst.msk partial stores otherwise).
    op_pad = _round_up(op, LANE)
    if op_pad != op:
        w3 = jnp.pad(w3, ((0, 0), (0, op_pad - op)))
        b3 = jnp.pad(b3, ((0, 0), (0, op_pad - op)))

    # Batch tiling: sublane tile must be a multiple of 8; pad B to whole tiles.
    tb = min(tile_b, _round_up(B, 8))
    Bp = _round_up(B, tb)
    if Bp != B:
        x = jnp.pad(x, ((0, Bp - B), (0, 0)))

    grid = (Bp // tb,)

    wbytes = sum(int(a.size) * a.dtype.itemsize for a in (w1, b1, w2, b2, w3, b3))
    cost = pl.CostEstimate(
        flops=2 * Bp * (ip * hid + hid * hid + hid * op_pad),
        transcendentals=0,
        bytes_accessed=int(x.dtype.itemsize) * Bp * ip + 4 * Bp * op_pad + wbytes,
    )

    out = pl.pallas_call(
        _mlp_kernel,
        out_shape=jax.ShapeDtypeStruct((Bp, op_pad), jnp.float32),
        grid=grid,
        in_specs=[
            pl.BlockSpec((tb, ip), lambda i: (i, 0)),     # x: streamed over batch
            pl.BlockSpec((ip, hid), lambda i: (0, 0)),    # weights / biases stay
            pl.BlockSpec((1, hid), lambda i: (0, 0)),     #   VMEM-resident
            pl.BlockSpec((hid, hid), lambda i: (0, 0)),
            pl.BlockSpec((1, hid), lambda i: (0, 0)),
            pl.BlockSpec((hid, op_pad), lambda i: (0, 0)),
            pl.BlockSpec((1, op_pad), lambda i: (0, 0)),
        ],
        out_specs=pl.BlockSpec((tb, op_pad), lambda i: (i, 0)),
        compiler_params=pltpu.CompilerParams(
            dimension_semantics=("parallel",),  # v7x: shard batch tiles over 2 TCs
        ),
        cost_estimate=cost,
    )(x, w1, b1, w2, b2, w3, b3)

    # Strip batch/lane padding back to the module's logical output shape.
    return out[:B, :op]
    # TODO(synk): for full-step DQN perf, fuse the Q-value consumer (argmax /
    # TD-target gather) into this kernel so the (B, op) slab never hits HBM.


def init_params(key, ip_size, op_size, hidden=HIDDEN):
    """torch.nn.Linear-style init: U(-1/sqrt(fan_in), 1/sqrt(fan_in))."""
    ks = jax.random.split(key, 6)

    def lin(kw, kb, fan_in, fan_out):
        bound = 1.0 / jnp.sqrt(jnp.float32(fan_in))
        w = jax.random.uniform(kw, (fan_in, fan_out), jnp.float32, -bound, bound)
        b = jax.random.uniform(kb, (1, fan_out), jnp.float32, -bound, bound)
        return w, b

    w1, b1 = lin(ks[0], ks[1], ip_size, hidden)
    w2, b2 = lin(ks[2], ks[3], hidden, hidden)
    w3, b3 = lin(ks[4], ks[5], hidden, op_size)
    return w1, b1, w2, b2, w3, b3


def reference_forward(x, w1, b1, w2, b2, w3, b3):
    h1 = jnp.maximum(x @ w1 + b1, 0.0)
    h2 = jnp.maximum(h1 @ w2 + b2, 0.0)
    return h2 @ w3 + b3


if __name__ == "__main__":
    # Shapes consistent with a small DQN; batch matches the module's batch_size=32.
    batch, ip_size, op_size = 32, 8, 4

    key = jax.random.PRNGKey(0)
    k_x, k_p = jax.random.split(key)
    x = jax.random.normal(k_x, (batch, ip_size), dtype=jnp.float32)
    w1, b1, w2, b2, w3, b3 = init_params(k_p, ip_size, op_size)

    ref = reference_forward(x, w1, b1, w2, b2, w3, b3)

    # f32 path: exact (tight tolerance) check vs reference.
    out = jax.block_until_ready(dqn_forward(x, w1, b1, w2, b2, w3, b3))
    assert out.shape == (batch, op_size)
    assert jnp.allclose(out, ref, atol=1e-4, rtol=1e-4), "f32 mismatch vs reference"

    # bf16-weight path (v6e/v7x MXU-native, halves weight/activation DMA bytes);
    # f32 accumulation keeps it close to the f32 reference.
    w1b, w2b, w3b = (w.astype(jnp.bfloat16) for w in (w1, w2, w3))
    out_bf16 = jax.block_until_ready(dqn_forward(x, w1b, b1, w2b, b2, w3b, b3))
    assert out_bf16.shape == (batch, op_size)
    assert jnp.allclose(out_bf16, ref, atol=5e-2, rtol=5e-2), "bf16 mismatch vs reference"

    print("KERNEL_OK")
</pallas_src>

<mosaic_0001>
module attributes {stable_mosaic.version = 11 : i64} {
  func.func @_mlp_kernel(%arg0: i32, %arg1: memref<32x8xf32, #tpu.memory_space<vmem>>, %arg2: memref<8x64xf32, #tpu.memory_space<vmem>>, %arg3: memref<1x64xf32, #tpu.memory_space<vmem>>, %arg4: memref<64x64xf32, #tpu.memory_space<vmem>>, %arg5: memref<1x64xf32, #tpu.memory_space<vmem>>, %arg6: memref<64x128xf32, #tpu.memory_space<vmem>>, %arg7: memref<1x128xf32, #tpu.memory_space<vmem>>, %arg8: memref<32x128xf32, #tpu.memory_space<vmem>>) attributes {dimension_semantics = [#tpu.dimension_semantics<parallel>], iteration_bounds = array<i64: 1>, scalar_prefetch = 0 : i64, scratch_operands = 0 : i64, tpu.core_type = #tpu.core_type<tc>, window_params = [{transform_indices = @transform_0, window_bounds = array<i64: 32, 8>}, {pipeline_mode = #tpu.pipeline_mode<synchronous>, transform_indices = @transform_1, window_bounds = array<i64: 8, 64>}, {pipeline_mode = #tpu.pipeline_mode<synchronous>, transform_indices = @transform_2, window_bounds = array<i64: 1, 64>}, {pipeline_mode = #tpu.pipeline_mode<synchronous>, transform_indices = @transform_3, window_bounds = array<i64: 64, 64>}, {pipeline_mode = #tpu.pipeline_mode<synchronous>, transform_indices = @transform_4, window_bounds = array<i64: 1, 64>}, {pipeline_mode = #tpu.pipeline_mode<synchronous>, transform_indices = @transform_5, window_bounds = array<i64: 64, 128>}, {pipeline_mode = #tpu.pipeline_mode<synchronous>, transform_indices = @transform_6, window_bounds = array<i64: 1, 128>}, {transform_indices = @transform_7, window_bounds = array<i64: 32, 128>}]} {
    %c0 = arith.constant 0 : index
    %c0_0 = arith.constant 0 : index
    %0 = vector.load %arg1[%c0, %c0_0] : memref<32x8xf32, #tpu.memory_space<vmem>>, vector<32x8xf32>
    %c0_1 = arith.constant 0 : index
    %c0_2 = arith.constant 0 : index
    %1 = vector.load %arg2[%c0_1, %c0_2] : memref<8x64xf32, #tpu.memory_space<vmem>>, vector<8x64xf32>
    %cst = arith.constant dense<0.000000e+00> : vector<32x64xf32>
    %2 = tpu.matmul %0, %1, %cst {dimension_numbers = #tpu.dot_dimension_numbers<[1], [0], [0], [1], [0, 0, 1, 1], [], []>} : vector<32x8xf32>, vector<8x64xf32>, vector<32x64xf32> -> vector<32x64xf32>
    %c0_3 = arith.constant 0 : index
    %c0_4 = arith.constant 0 : index
    %3 = vector.load %arg3[%c0_3, %c0_4] : memref<1x64xf32, #tpu.memory_space<vmem>>, vector<1x64xf32>
    %4 = vector.broadcast %3 : vector<1x64xf32> to vector<32x64xf32>
    %5 = arith.addf %2, %4 : vector<32x64xf32>
    %cst_5 = arith.constant 0.000000e+00 : f32
    %6 = vector.broadcast %cst_5 : f32 to vector<32x64xf32>
    %7 = arith.maximumf %5, %6 : vector<32x64xf32>
    %c0_6 = arith.constant 0 : index
    %c0_7 = arith.constant 0 : index
    %8 = vector.load %arg4[%c0_6, %c0_7] : memref<64x64xf32, #tpu.memory_space<vmem>>, vector<64x64xf32>
    %cst_8 = arith.constant dense<0.000000e+00> : vector<32x64xf32>
    %9 = tpu.matmul %7, %8, %cst_8 {dimension_numbers = #tpu.dot_dimension_numbers<[1], [0], [0], [1], [0, 0, 1, 1], [], []>} : vector<32x64xf32>, vector<64x64xf32>, vector<32x64xf32> -> vector<32x64xf32>
    %c0_9 = arith.constant 0 : index
    %c0_10 = arith.constant 0 : index
    %10 = vector.load %arg5[%c0_9, %c0_10] : memref<1x64xf32, #tpu.memory_space<vmem>>, vector<1x64xf32>
    %11 = vector.broadcast %10 : vector<1x64xf32> to vector<32x64xf32>
    %12 = arith.addf %9, %11 : vector<32x64xf32>
    %cst_11 = arith.constant 0.000000e+00 : f32
    %13 = vector.broadcast %cst_11 : f32 to vector<32x64xf32>
    %14 = arith.maximumf %12, %13 : vector<32x64xf32>
    %c0_12 = arith.constant 0 : index
    %c0_13 = arith.constant 0 : index
    %15 = vector.load %arg6[%c0_12, %c0_13] : memref<64x128xf32, #tpu.memory_space<vmem>>, vector<64x128xf32>
    %cst_14 = arith.constant dense<0.000000e+00> : vector<32x128xf32>
    %16 = tpu.matmul %14, %15, %cst_14 {dimension_numbers = #tpu.dot_dimension_numbers<[1], [0], [0], [1], [0, 0, 1, 1], [], []>} : vector<32x64xf32>, vector<64x128xf32>, vector<32x128xf32> -> vector<32x128xf32>
    %c0_15 = arith.constant 0 : index
    %c0_16 = arith.constant 0 : index
    %17 = vector.load %arg7[%c0_15, %c0_16] : memref<1x128xf32, #tpu.memory_space<vmem>>, vector<1x128xf32>
    %18 = vector.broadcast %17 : vector<1x128xf32> to vector<32x128xf32>
    %19 = arith.addf %16, %18 : vector<32x128xf32>
    %c0_17 = arith.constant 0 : index
    %c0_18 = arith.constant 0 : index
    %20 = vector.load %arg8[%c0_17, %c0_18] : memref<32x128xf32, #tpu.memory_space<vmem>>, vector<32x128xf32>
    tpu.vector_store %arg8[%c0_17, %c0_18], %19 {strides = array<i32>} : memref<32x128xf32, #tpu.memory_space<vmem>>, vector<32x128xf32>,
    return
  }
  func.func @transform_0(%arg0: i32) -> (i32, i32) {
    %c0_i32 = arith.constant 0 : i32
    %c0_i32_0 = arith.constant 0 : i32
    return %arg0, %c0_i32 : i32, i32
  }
  func.func @transform_1(%arg0: i32) -> (i32, i32) {
    %c0_i32 = arith.constant 0 : i32
    %c0_i32_0 = arith.constant 0 : i32
    %c0_i32_1 = arith.constant 0 : i32
    return %c0_i32, %c0_i32_0 : i32, i32
  }
  func.func @transform_2(%arg0: i32) -> (i32, i32) {
    %c0_i32 = arith.constant 0 : i32
    %c0_i32_0 = arith.constant 0 : i32
    %c0_i32_1 = arith.constant 0 : i32
    return %c0_i32, %c0_i32_0 : i32, i32
  }
  func.func @transform_3(%arg0: i32) -> (i32, i32) {
    %c0_i32 = arith.constant 0 : i32
    %c0_i32_0 = arith.constant 0 : i32
    %c0_i32_1 = arith.constant 0 : i32
    return %c0_i32, %c0_i32_0 : i32, i32
  }
  func.func @transform_4(%arg0: i32) -> (i32, i32) {
    %c0_i32 = arith.constant 0 : i32
    %c0_i32_0 = arith.constant 0 : i32
    %c0_i32_1 = arith.constant 0 : i32
    return %c0_i32, %c0_i32_0 : i32, i32
  }
  func.func @transform_5(%arg0: i32) -> (i32, i32) {
    %c0_i32 = arith.constant 0 : i32
    %c0_i32_0 = arith.constant 0 : i32
    %c0_i32_1 = arith.constant 0 : i32
    return %c0_i32, %c0_i32_0 : i32, i32
  }
  func.func @transform_6(%arg0: i32) -> (i32, i32) {
    %c0_i32 = arith.constant 0 : i32
    %c0_i32_0 = arith.constant 0 : i32
    %c0_i32_1 = arith.constant 0 : i32
    return %c0_i32, %c0_i32_0 : i32, i32
  }
  func.func @transform_7(%arg0: i32) -> (i32, i32) {
    %c0_i32 = arith.constant 0 : i32
    %c0_i32_0 = arith.constant 0 : i32
    return %arg0, %c0_i32 : i32, i32
  }
}

</mosaic_0001>

<bundles_post_ra>
// kernel: dqn_forward.1
= control target key start
LH: loop header
LB: loop body
LE: loop exit
PB: predicated region body
PF: predicated region fallthrough
CT: control target
= control target key end

     0   :  { %vm35_vm0 = vcmask 64512   ;;  %vm93_vm1 = vcmask 523264   ;;  %s367_s1 = inlined_call_operand.vmem [shape: f32[8,64], index: 1, kind: input, shape index: {}]   ;;  %s368_s0 = inlined_call_operand.vmem [shape: f32[32,8], index: 0, kind: input, shape index: {}]   ;;  %s369_s3 = inlined_call_operand.vmem [shape: f32[64,64], index: 3, kind: input, shape index: {}]   ;;  %s370_s2 = inlined_call_operand.vmem [shape: f32[1,64], index: 2, kind: input, shape index: {}]   ;;  %s371_s4 = inlined_call_operand.vmem [shape: f32[1,64], index: 4, kind: input, shape index: {}]   ;;  %s372_s5 = inlined_call_operand.vmem [shape: f32[64,128], index: 5, kind: input, shape index: {}]   ;;  %s373_s6 = inlined_call_operand.vmem [shape: f32[1,128], index: 6, kind: input, shape index: {}]   ;;  %s374_s7 = inlined_call_operand.vmem [shape: f32[32,128], index: 7, kind: output, shape index: {}]  }
   0x1   :  { %v30_v0 = vld [vmem:[%s367_s1] sm:$0xff]  ;;  %v88_v2 = vld [vmem:[%s369_s3 + $0x38] sm:$0xff]  ;;  %v87_v3 = vld [vmem:[%s369_s3 + $0x30] sm:$0xff] }
   0x2   :  { %v26_v1 = vld [vmem:[%s368_s0] sm:$0xff]  ;;  %63 = vmatpush.msra.mxu0 %v30_v0  ;;  %114 = vmatpush.msra.mxu1 %v88_v2  ;;  %v86_v4 = vld [vmem:[%s369_s3 + $0x28] sm:$0xff]  ;;  %v84_v7 = vld [vmem:[%s369_s3 + $0x18] sm:$0xff] }
   0x3   :  { %200 = vmatmul.msk.f32.vlgmr.msra.gmra.mxu0 %vm35_vm0, %v26_v1  ;;  %212 = vmatpush.msra.mxu3 %v88_v2  ;;  %v85_v5 = vld [vmem:[%s369_s3 + $0x20] sm:$0xff]  ;;  %v27_v6 = vld [vmem:[%s368_s0 + $0x8] sm:$0xff]  ;;  %v28_v8 = vld [vmem:[%s368_s0 + $0x10] sm:$0xff] }
   0x4   :  { %115 = vmatpush.msra.mxu1 %v87_v3  ;;  %v29_v9 = vld [vmem:[%s368_s0 + $0x18] sm:$0xff]  ;;  %v83_v10 = vld [vmem:[%s369_s3 + $0x10] sm:$0xff]  ;;  %v82_v11 = vld [vmem:[%s369_s3 + $0x8] sm:$0xff] }
   0x5   :  { %213 = vmatpush.msra.mxu3 %v87_v3  ;;  %v81_v12 = vld [vmem:[%s369_s3] sm:$0xff]  ;;  %v146_v14 = vld [vmem:[%s372_s5 + $0x38] sm:$0xff]  ;;  %v145_v15 = vld [vmem:[%s372_s5 + $0x30] sm:$0xff] }
   0x6   :  { %116 = vmatpush.msra.mxu1 %v86_v4  ;;  %v228_v13 = vld [vmem:[%s370_s2] ss:$0 sm:$0xff]  ;;  %220 = vmatpush.msra.mxu2 %v146_v14  ;;  %v144_v16 = vld [vmem:[%s372_s5 + $0x28] sm:$0xff]  ;;  %v142_v21 = vld [vmem:[%s372_s5 + $0x18] sm:$0xff] }
   0x7   :  { %214 = vmatpush.msra.mxu3 %v86_v4  ;;  %v143_v19 = vld [vmem:[%s372_s5 + $0x20] sm:$0xff]  ;;  %v141_v31 = vld [vmem:[%s372_s5 + $0x10] sm:$0xff]  ;;  %v140_v32 = vld [vmem:[%s372_s5 + $0x8] sm:$0xff] }
   0x8   :  { %117 = vmatpush.msra.mxu1 %v85_v5  ;;  %221 = vmatpush.msra.mxu2 %v145_v15  ;;  %v139_v33 = vld [vmem:[%s372_s5] sm:$0xff] }
   0x9   :  { %215 = vmatpush.msra.mxu3 %v85_v5  ;;  %v229_v34 = vld [vmem:[%s371_s4] ss:$0 sm:$0xff] }
   0xa   :  { %118 = vmatpush.msra.mxu1 %v84_v7  ;;  %222 = vmatpush.msra.mxu2 %v144_v16  ;;  %v230_v47 = vld [vmem:[%s373_s6] ss:$0 sm:$0xff] }
   0xb   :  { %201 = vmatmul.msk.f32.gmra.mxu0 %vm35_vm0, %v27_v6  ;;  %216 = vmatpush.msra.mxu3 %v84_v7 }
   0xc   :  { %119 = vmatpush.msra.mxu1 %v83_v10  ;;  %223 = vmatpush.msra.mxu2 %v143_v19 }
   0xd   :  { %217 = vmatpush.msra.mxu3 %v83_v10 }
   0xe   :  { %120 = vmatpush.msra.mxu1 %v82_v11  ;;  %224 = vmatpush.msra.mxu2 %v142_v21 }
   0xf   :  { %218 = vmatpush.msra.mxu3 %v82_v11 }
  0x10   :  { %121 = vmatpush.msra.mxu1 %v81_v12  ;;  %225 = vmatpush.msra.mxu2 %v141_v31 }
  0x11   :  { %219 = vmatpush.msra.mxu3 %v81_v12 }
  0x12   :  { %171 = vmatpush.msrb.mxu1 %v146_v14  ;;  %226 = vmatpush.msra.mxu2 %v140_v32 }
  0x13   :  { %202 = vmatmul.msk.f32.gmra.mxu0 %vm35_vm0, %v28_v8 }
  0x14   :  { %172 = vmatpush.msrb.mxu1 %v145_v15  ;;  %227 = vmatpush.msra.mxu2 %v139_v33 }
  0x16   :  { %173 = vmatpush.msrb.mxu1 %v144_v16 }
  0x18   :  { %174 = vmatpush.msrb.mxu1 %v143_v19 }
  0x1a   :  { %175 = vmatpush.msrb.mxu1 %v142_v21 }
  0x1b   :  { %203 = vmatmul.msk.f32.gmra.mxu0 %vm35_vm0, %v29_v9 }
  0x1c   :  { %176 = vmatpush.msrb.mxu1 %v141_v31 }
  0x1e   :  { %177 = vmatpush.msrb.mxu1 %v140_v32 }
  0x20   :  { %178 = vmatpush.msrb.mxu1 %v139_v33 }
  0x80   :  { %v65_v17 = vpop.f32.mrf.mxu0 }
  0x81   :  { %v66_v18 = vadd.f32 %v228_v13, %v65_v17 }
  0x83   :  { %v77_v20 = vmax.f32 %v66_v18, 0.0 }
  0x85   :  { %204 = vmatmul.msk.f32.vlgmr.msra.gmra.mxu1 %vm93_vm1, %v77_v20 }
  0x88   :  { %v68_v22 = vpop.f32.mrf.mxu0 }
  0x89   :  { %v69_v23 = vadd.f32 %v228_v13, %v68_v22 }
  0x8b   :  { %v78_v24 = vmax.f32 %v69_v23, 0.0 }
  0x8d   :  { %205 = vmatmul.msk.f32.vlgmr.msra.gmra.mxu3 %vm93_vm1, %v78_v24 }
  0x90   :  { %v71_v25 = vpop.f32.mrf.mxu0 }
  0x91   :  { %v72_v26 = vadd.f32 %v228_v13, %v71_v25 }
  0x93   :  { %v79_v27 = vmax.f32 %v72_v26, 0.0 }
  0x95   :  { %206 = vmatmul.msk.f32.gmra.mxu3 %vm93_vm1, %v79_v27 }
  0x98   :  { %v74_v28 = vpop.f32.mrf.mxu0 }
  0x99   :  { %v75_v29 = vadd.f32 %v228_v13, %v74_v28 }
  0x9b   :  { %v80_v30 = vmax.f32 %v75_v29, 0.0 }
  0x9d   :  { %207 = vmatmul.msk.f32.gmra.mxu3 %vm93_vm1, %v80_v30 }
 0x102   :  { %v123_v35 = vpop.f32.mrf.mxu1 }
 0x103   :  { %v124_v36 = vadd.f32 %v229_v34, %v123_v35 }
 0x105   :  { %v135_v37 = vmax.f32 %v124_v36, 0.0 }
 0x107   :  { %208 = vmatmul.msk.f32.vlgmr.msrb.gmra.mxu1 %vm93_vm1, %v135_v37 }
 0x110   :  { %v126_v38 = vpop.f32.mrf.mxu3 }
 0x111   :  { %v127_v39 = vadd.f32 %v229_v34, %v126_v38 }
 0x113   :  { %v136_v40 = vmax.f32 %v127_v39, 0.0 }
 0x115   :  { %209 = vmatmul.msk.f32.vlgmr.msra.gmra.mxu2 %vm93_vm1, %v136_v40 }
 0x118   :  { %v129_v41 = vpop.f32.mrf.mxu3 }
 0x119   :  { %v130_v42 = vadd.f32 %v229_v34, %v129_v41 }
 0x11b   :  { %v137_v43 = vmax.f32 %v130_v42, 0.0 }
 0x11d   :  { %210 = vmatmul.msk.f32.gmra.mxu2 %vm93_vm1, %v137_v43 }
 0x120   :  { %v132_v44 = vpop.f32.mrf.mxu3 }
 0x121   :  { %v133_v45 = vadd.f32 %v229_v34, %v132_v44 }
 0x123   :  { %v138_v46 = vmax.f32 %v133_v45, 0.0 }
 0x125   :  { %211 = vmatmul.msk.f32.gmra.mxu2 %vm93_vm1, %v138_v46 }
 0x184   :  { %v180_v48 = vpop.f32.mrf.mxu1 }
 0x185   :  { %v181_v49 = vadd.f32 %v230_v47, %v180_v48 }
 0x187   :  { %192 = vst [vmem:[%s374_s7] sm:$0xff] %v181_v49 }
 0x198   :  { %v183_v50 = vpop.f32.mrf.mxu2 }
 0x199   :  { %v184_v51 = vadd.f32 %v230_v47, %v183_v50 }
 0x19b   :  { %193 = vst [vmem:[%s374_s7 + $0x8] sm:$0xff] %v184_v51 }
 0x1a0   :  { %v186_v52 = vpop.f32.mrf.mxu2 }
 0x1a1   :  { %v187_v53 = vadd.f32 %v230_v47, %v186_v52 }
 0x1a3   :  { %194 = vst [vmem:[%s374_s7 + $0x10] sm:$0xff] %v187_v53 }
 0x1a8   :  { %v189_v54 = vpop.f32.mrf.mxu2 }
 0x1a9   :  { %v190_v55 = vadd.f32 %v230_v47, %v189_v54 }
 0x1ab   :  { %195 = vst [vmem:[%s374_s7 + $0x18] sm:$0xff] %v190_v55 }

</bundles_post_ra>
